<compile_context>
chip_gen: v7x
topology: tpu7x:2x2x1
jax: 0.10.0
libtpu: 0.0.40
codegen_flags: <defaults>
</compile_context>

<pallas_src>
import functools

import jax
import jax.numpy as jnp
from jax.experimental import pallas as pl
from jax.experimental.pallas import tpu as pltpu


def _chip_info():
    """Best-effort chip detection: (tensorcores_per_chip, use_bf16_mxu_operands)."""
    try:
        kind = jax.devices()[0].device_kind.lower()
    except Exception:  # non-TPU / unknown backend: conservative defaults
        kind = ""
    num_cores = 2 if "v7" in kind else 1        # v7x: 2 TCs/chip; v5e/v6e: 1
    use_bf16 = ("v6" in kind) or ("v7" in kind)  # v5e/older: f32 operands (no bf16 VPU)
    return num_cores, use_bf16


def feature_mixer_kernel(xT_ref, w1_ref, b1_ref, w2_ref, b2_ref, out_ref,
                         *, ln_eps, mxu_dtype):
    """One lane-dense column block: xT_ref is (D, nb); every column is an independent row.

    LayerNorm affine is pre-folded into (w1, b1) wrapper-side.
    """
    x = xT_ref[...]                                           # (D, nb) f32
    inv_d = 1.0 / x.shape[0]

    # ---- LayerNorm over the feature dim D (axis 0), centered single pass ----
    mu  = jnp.sum(x, axis=0, keepdims=True) * inv_d           # (1, nb)
    xc  = x - mu                                              # (D, nb)
    var = jnp.sum(xc * xc, axis=0, keepdims=True) * inv_d     # biased, as nn.LayerNorm
    xn  = xc * jax.lax.rsqrt(var + ln_eps)                    # (D, nb)

    # ---- MLP over D; MXU N = nb (lane-dense); f32 accumulation ----
    h = jnp.dot(w1_ref[...], xn.astype(mxu_dtype),
                preferred_element_type=jnp.float32) + b1_ref[...]   # (H, nb)
    h = jnp.maximum(h, 0.0)                                          # ReLU
    y = jnp.dot(w2_ref[...], h.astype(mxu_dtype),
                preferred_element_type=jnp.float32) + b2_ref[...]   # (D, nb)

    # ---- residual: re-read x from VMEM (don't hold 32 f32 vregs across the MXU section)
    out_ref[...] = xT_ref[...] + y


def fold_params(params, *, mxu_dtype=jnp.bfloat16):
    """Fold the LayerNorm affine into the first linear (exact algebra, wrapper-side).

    params: (gamma(D,), beta(D,), W1(H,D), b1(H,), W2(D,H), b2(D,))
    returns (W1'(H,D) mxu_dtype, b1'(H,1) f32, W2(D,H) mxu_dtype, b2(D,1) f32)
    """
    g, beta, w1, b1, w2, b2 = params
    H, D = w1.shape
    w1_eff = (w1.astype(jnp.float32) * g.astype(jnp.float32)[None, :])
    b1_eff = b1.astype(jnp.float32) + w1.astype(jnp.float32) @ beta.astype(jnp.float32)
    return (w1_eff.astype(mxu_dtype),
            b1_eff.reshape(H, 1).astype(jnp.float32),
            w2.astype(mxu_dtype),
            b2.reshape(D, 1).astype(jnp.float32))


def feature_mixer_forward_T(xT, folded_params, *, col_block=1024, ln_eps=1e-5,
                            num_cores=None, mxu_dtype=None):
    """Transposed-layout entry point: xT is (D, N) with N independent columns.

    Use this across a stack of FeatureMixerLayers (mix_depth > 1) so the layout
    transpose is paid once for the whole stack, not once per layer.
    Returns (D, N) f32.
    """
    D, N = xT.shape
    w1b, b12, w2b, b22 = folded_params
    if num_cores is None or mxu_dtype is None:
        nc, bf = _chip_info()
        num_cores = nc if num_cores is None else num_cores
        mxu_dtype = (jnp.bfloat16 if bf else jnp.float32) if mxu_dtype is None else mxu_dtype
    w1b = w1b.astype(mxu_dtype)
    w2b = w2b.astype(mxu_dtype)

    # Lane-dense column block (multiple of 128).  Only on multi-TC chips (v7x) do we
    # cap the block so there are >= num_cores grid steps; on 1-TC chips one big block
    # per step minimizes the ~0.35us/step overhead.
    nb = max(128, min(col_block, pl.cdiv(N, 128) * 128))
    nb = (nb // 128) * 128
    if num_cores > 1:
        per_core = max(128, pl.cdiv(pl.cdiv(N, num_cores), 128) * 128)
        nb = min(nb, per_core)
    n_steps = pl.cdiv(N, nb)
    if num_cores > 1:
        n_steps = pl.cdiv(n_steps, num_cores) * num_cores   # even split across TCs
    n_pad = n_steps * nb
    if n_pad != N:
        xT = jnp.pad(xT, ((0, 0), (0, n_pad - N)))

    # Grid-invariant params: constant index_map -> same resident block every step.
    full = lambda a: pl.BlockSpec(a.shape, lambda i: (0,) * a.ndim)

    # Explicit VMEM budget: double-buffered in/out column blocks + resident weights,
    # with headroom; stays far below every generation's VMEM (v7x: 64 MiB).
    block_bytes = D * nb * 4
    weight_bytes = sum(int(a.size) * a.dtype.itemsize for a in (w1b, b12, w2b, b22))
    vmem_limit = int(min(64 * 1024 * 1024,
                         max(4 * 1024 * 1024, 8 * block_bytes + 4 * weight_bytes)))

    # CORE_PARALLEL only when we actually have >1 TC (v7x); plain "parallel" elsewhere.
    if num_cores > 1 and hasattr(pltpu, "CORE_PARALLEL"):
        dim_sem = (pltpu.CORE_PARALLEL,)
    else:
        dim_sem = ("parallel",)

    out = pl.pallas_call(
        functools.partial(feature_mixer_kernel, ln_eps=ln_eps, mxu_dtype=mxu_dtype),
        out_shape=jax.ShapeDtypeStruct((D, n_pad), jnp.float32),
        grid_spec=pltpu.PrefetchScalarGridSpec(
            num_scalar_prefetch=0,
            grid=(n_steps,),
            in_specs=[
                pl.BlockSpec((D, nb), lambda i: (0, i)),        # column block for this step
                full(w1b), full(b12), full(w2b), full(b22),
            ],
            out_specs=pl.BlockSpec((D, nb), lambda i: (0, i)),  # lane-dense store
        ),
        compiler_params=pltpu.CompilerParams(
            dimension_semantics=dim_sem,
            vmem_limit_bytes=vmem_limit,
        ),
    )(xT, w1b, b12, w2b, b22)

    return out[:, :N]


def feature_mixer_forward(x, params, *, col_block=1024, ln_eps=1e-5):
    """x: (B, C, D) float32.  params: (gamma(D,), beta(D,), W1(H,D), b1(H,), W2(D,H), b2(D,)).

    Returns (B, C, D) float32, same semantics as FeatureMixerLayer.forward.
    For stacked layers, transpose once and call feature_mixer_forward_T per layer.
    """
    B, C, D = x.shape
    num_cores, use_bf16 = _chip_info()
    mxu_dtype = jnp.bfloat16 if use_bf16 else jnp.float32

    folded = fold_params(params, mxu_dtype=mxu_dtype)

    # Layout plumbing (once per stack, not per layer): (B, C, D) -> (D, B*C).
    xT = jnp.transpose(x, (2, 0, 1)).reshape(D, B * C)
    yT = feature_mixer_forward_T(xT, folded, col_block=col_block, ln_eps=ln_eps,
                                 num_cores=num_cores, mxu_dtype=mxu_dtype)
    return jnp.transpose(yT.reshape(D, B, C), (1, 2, 0))


def feature_mixer_reference(x, params, *, ln_eps=1e-5):
    """Pure-JAX (f32) reference mirroring the PyTorch forward."""
    g, beta, w1, b1, w2, b2 = params
    mu = jnp.mean(x, axis=-1, keepdims=True)
    var = jnp.mean((x - mu) ** 2, axis=-1, keepdims=True)
    xn = (x - mu) / jnp.sqrt(var + ln_eps) * g + beta
    h = jnp.maximum(xn @ w1.T + b1, 0.0)
    return x + h @ w2.T + b2


def init_params(key, *, in_dim, mlp_ratio=1):
    """Matches the PyTorch init: trunc_normal(std=0.02) weights, zero biases, identity LN."""
    H = int(in_dim * mlp_ratio)
    k1, k2 = jax.random.split(key)
    g = jnp.ones((in_dim,), jnp.float32)
    beta = jnp.zeros((in_dim,), jnp.float32)
    w1 = 0.02 * jax.random.truncated_normal(k1, -2.0, 2.0, (H, in_dim), jnp.float32)
    b1 = jnp.zeros((H,), jnp.float32)
    w2 = 0.02 * jax.random.truncated_normal(k2, -2.0, 2.0, (in_dim, H), jnp.float32)
    b2 = jnp.zeros((in_dim,), jnp.float32)
    return (g, beta, w1, b1, w2, b2)


if __name__ == "__main__":
    # Shapes consistent with the module's use in the Mixer: x is (B, channels, in_dim).
    B, C, in_dim, mlp_ratio = 2, 256, 32, 1

    key = jax.random.PRNGKey(0)
    kx, kp = jax.random.split(key)
    x = jax.random.normal(kx, (B, C, in_dim), jnp.float32)
    params = init_params(kp, in_dim=in_dim, mlp_ratio=mlp_ratio)

    out = feature_mixer_forward(x, params)
    out = jax.block_until_ready(out)

    ref = feature_mixer_reference(x, params)
    assert out.shape == (B, C, in_dim)
    max_err = float(jnp.max(jnp.abs(out - ref)))
    # bf16 MXU operands (v6e/v7x) with f32 accumulation: error << 1e-3 at these
    # weight scales; on v5e/older the MXU path is pure f32 and the error is tiny.
    assert jnp.allclose(out, ref, atol=2e-3, rtol=2e-3), max_err

    print("KERNEL_OK")
</pallas_src>

<mosaic_0001>
module attributes {stable_mosaic.version = 11 : i64} {
  func.func @feature_mixer_kernel(%arg0: i32, %arg1: memref<32x512xf32, #tpu.memory_space<vmem>>, %arg2: memref<32x32xf32, #tpu.memory_space<vmem>>, %arg3: memref<32x1xf32, #tpu.memory_space<vmem>>, %arg4: memref<32x32xf32, #tpu.memory_space<vmem>>, %arg5: memref<32x1xf32, #tpu.memory_space<vmem>>, %arg6: memref<32x512xf32, #tpu.memory_space<vmem>>) attributes {dimension_semantics = [#tpu.dimension_semantics<parallel>], iteration_bounds = array<i64: 1>, scalar_prefetch = 0 : i64, scratch_operands = 0 : i64, tpu.core_type = #tpu.core_type<tc>, window_params = [{transform_indices = @transform_0, window_bounds = array<i64: 32, 512>}, {pipeline_mode = #tpu.pipeline_mode<synchronous>, transform_indices = @transform_1, window_bounds = array<i64: 32, 32>}, {pipeline_mode = #tpu.pipeline_mode<synchronous>, transform_indices = @transform_2, window_bounds = array<i64: 32, 1>}, {pipeline_mode = #tpu.pipeline_mode<synchronous>, transform_indices = @transform_3, window_bounds = array<i64: 32, 32>}, {pipeline_mode = #tpu.pipeline_mode<synchronous>, transform_indices = @transform_4, window_bounds = array<i64: 32, 1>}, {transform_indices = @transform_5, window_bounds = array<i64: 32, 512>}]} {
    %c0 = arith.constant 0 : index
    %c0_0 = arith.constant 0 : index
    %0 = vector.load %arg1[%c0, %c0_0] : memref<32x512xf32, #tpu.memory_space<vmem>>, vector<32x512xf32>
    %cst = arith.constant dense<0.000000e+00> : vector<512xf32>
    %1 = vector.multi_reduction <add>, %0, %cst [0] : vector<32x512xf32> to vector<512xf32>
    %2 = vector.shape_cast %1 : vector<512xf32> to vector<1x512xf32>
    %cst_1 = arith.constant 3.125000e-02 : f32
    %3 = vector.broadcast %cst_1 : f32 to vector<1x512xf32>
    %4 = arith.mulf %2, %3 : vector<1x512xf32>
    %5 = vector.broadcast %4 : vector<1x512xf32> to vector<32x512xf32>
    %6 = arith.subf %0, %5 : vector<32x512xf32>
    %7 = arith.mulf %6, %6 : vector<32x512xf32>
    %cst_2 = arith.constant dense<0.000000e+00> : vector<512xf32>
    %8 = vector.multi_reduction <add>, %7, %cst_2 [0] : vector<32x512xf32> to vector<512xf32>
    %9 = vector.shape_cast %8 : vector<512xf32> to vector<1x512xf32>
    %cst_3 = arith.constant 3.125000e-02 : f32
    %10 = vector.broadcast %cst_3 : f32 to vector<1x512xf32>
    %11 = arith.mulf %9, %10 : vector<1x512xf32>
    %cst_4 = arith.constant 9.99999974E-6 : f32
    %12 = vector.broadcast %cst_4 : f32 to vector<1x512xf32>
    %13 = arith.addf %11, %12 : vector<1x512xf32>
    %14 = math.rsqrt %13 : vector<1x512xf32>
    %15 = vector.broadcast %14 : vector<1x512xf32> to vector<32x512xf32>
    %16 = arith.mulf %6, %15 : vector<32x512xf32>
    %c0_5 = arith.constant 0 : index
    %c0_6 = arith.constant 0 : index
    %17 = vector.load %arg2[%c0_5, %c0_6] : memref<32x32xf32, #tpu.memory_space<vmem>>, vector<32x32xf32>
    %cst_7 = arith.constant dense<0.000000e+00> : vector<32x512xf32>
    %18 = tpu.matmul %17, %16, %cst_7 {dimension_numbers = #tpu.dot_dimension_numbers<[1], [0], [0], [1], [0, 0, 1, 1], [], []>} : vector<32x32xf32>, vector<32x512xf32>, vector<32x512xf32> -> vector<32x512xf32>
    %c0_8 = arith.constant 0 : index
    %c0_9 = arith.constant 0 : index
    %19 = vector.load %arg3[%c0_8, %c0_9] : memref<32x1xf32, #tpu.memory_space<vmem>>, vector<32x1xf32>
    %20 = vector.broadcast %19 : vector<32x1xf32> to vector<32x512xf32>
    %21 = arith.addf %18, %20 : vector<32x512xf32>
    %cst_10 = arith.constant 0.000000e+00 : f32
    %22 = vector.broadcast %cst_10 : f32 to vector<32x512xf32>
    %23 = arith.maximumf %21, %22 : vector<32x512xf32>
    %c0_11 = arith.constant 0 : index
    %c0_12 = arith.constant 0 : index
    %24 = vector.load %arg4[%c0_11, %c0_12] : memref<32x32xf32, #tpu.memory_space<vmem>>, vector<32x32xf32>
    %cst_13 = arith.constant dense<0.000000e+00> : vector<32x512xf32>
    %25 = tpu.matmul %24, %23, %cst_13 {dimension_numbers = #tpu.dot_dimension_numbers<[1], [0], [0], [1], [0, 0, 1, 1], [], []>} : vector<32x32xf32>, vector<32x512xf32>, vector<32x512xf32> -> vector<32x512xf32>
    %c0_14 = arith.constant 0 : index
    %c0_15 = arith.constant 0 : index
    %26 = vector.load %arg5[%c0_14, %c0_15] : memref<32x1xf32, #tpu.memory_space<vmem>>, vector<32x1xf32>
    %27 = vector.broadcast %26 : vector<32x1xf32> to vector<32x512xf32>
    %28 = arith.addf %25, %27 : vector<32x512xf32>
    %c0_16 = arith.constant 0 : index
    %c0_17 = arith.constant 0 : index
    %29 = vector.load %arg1[%c0_16, %c0_17] : memref<32x512xf32, #tpu.memory_space<vmem>>, vector<32x512xf32>
    %30 = arith.addf %29, %28 : vector<32x512xf32>
    %c0_18 = arith.constant 0 : index
    %c0_19 = arith.constant 0 : index
    %31 = vector.load %arg6[%c0_18, %c0_19] : memref<32x512xf32, #tpu.memory_space<vmem>>, vector<32x512xf32>
    tpu.vector_store %arg6[%c0_18, %c0_19], %30 {strides = array<i32>} : memref<32x512xf32, #tpu.memory_space<vmem>>, vector<32x512xf32>,
    return
  }
  func.func @transform_0(%arg0: i32) -> (i32, i32) {
    %c0_i32 = arith.constant 0 : i32
    %c0_i32_0 = arith.constant 0 : i32
    return %c0_i32, %arg0 : i32, i32
  }
  func.func @transform_1(%arg0: i32) -> (i32, i32) {
    %c0_i32 = arith.constant 0 : i32
    %c0_i32_0 = arith.constant 0 : i32
    %c0_i32_1 = arith.constant 0 : i32
    return %c0_i32, %c0_i32_0 : i32, i32
  }
  func.func @transform_2(%arg0: i32) -> (i32, i32) {
    %c0_i32 = arith.constant 0 : i32
    %c0_i32_0 = arith.constant 0 : i32
    %c0_i32_1 = arith.constant 0 : i32
    return %c0_i32, %c0_i32_0 : i32, i32
  }
  func.func @transform_3(%arg0: i32) -> (i32, i32) {
    %c0_i32 = arith.constant 0 : i32
    %c0_i32_0 = arith.constant 0 : i32
    %c0_i32_1 = arith.constant 0 : i32
    return %c0_i32, %c0_i32_0 : i32, i32
  }
  func.func @transform_4(%arg0: i32) -> (i32, i32) {
    %c0_i32 = arith.constant 0 : i32
    %c0_i32_0 = arith.constant 0 : i32
    %c0_i32_1 = arith.constant 0 : i32
    return %c0_i32, %c0_i32_0 : i32, i32
  }
  func.func @transform_5(%arg0: i32) -> (i32, i32) {
    %c0_i32 = arith.constant 0 : i32
    %c0_i32_0 = arith.constant 0 : i32
    return %c0_i32, %arg0 : i32, i32
  }
}

</mosaic_0001>

<bundles_post_ra>
// kernel: tpu_custom_call.1
= control target key start
LH: loop header
LB: loop body
LE: loop exit
PB: predicated region body
PF: predicated region fallthrough
CT: control target
= control target key end

     0   :  { %10 = vsyncpa [#allocation3], 0  ;;  %s1107_s0 = inlined_call_operand.hbm [shape: f32[32,512], index: 0, kind: input, shape index: {}]   ;;  %s1108_s1 = inlined_call_operand.vmem [shape: f32[32,32], index: 1, kind: input, shape index: {}]   ;;  %s1109_s2 = inlined_call_operand.vmem [shape: f32[32,1], index: 2, kind: input, shape index: {}]   ;;  %s1110_s3 = inlined_call_operand.vmem [shape: f32[32,32], index: 3, kind: input, shape index: {}]   ;;  %s1111_s4 = inlined_call_operand.vmem [shape: f32[32,1], index: 4, kind: input, shape index: {}]   ;;  %s1112_s5 = inlined_call_operand.hbm [shape: f32[32,512], index: 5, kind: output, shape index: {}]  }
   0x1   :  { %11 = vsyncpa [#allocation4], 0  ;;  %s801_s18 = smov [#allocation2]   ;;  %s753_s22 = scalar_lea.hbm %s1107_s0, 2048 }
   0x2   :  { %s17_s19 = sshll.u32 %s801_s18, 4  ;;  %p754_p0 = scmp.ne.s32.totalorder %s1107_s0, %s753_s22  ;;  %s18_s19 = int_to_ptr.vmem [resolvable:$true] %s17_s19 }
   0x3   :  { %p757_p1 = scmp.lt.u32.totalorder %s753_s22, %s1107_s0 }
   0x5   :  { %p759_p2 = pnand %p757_p1, %p754_p0 }
   0x7   :  { %762 = shalt.err (!%p759_p2)
}
   0x8   :  { %s763_s27 = scalar_lea.vmem %s18_s19, 2048  ;;  %p768_p4 = scmp.lt.s32.totalorder %s18_s19, %s18_s19 }
   0x9   :  { %p764_p3 = scmp.ne.s32.totalorder %s18_s19, %s763_s27  ;;  %p769_p5 = scmp.lt.s32.totalorder %s763_s27, %s763_s27 }
   0xb   :  { %p770_p6 = por %p769_p5, %p768_p4 }
   0xd   :  { %p771_p7 = pnand %p770_p6, %p764_p3 }
   0xf   :  { %774 = shalt.err (!%p771_p7)
}
  0x10   :  { %s802_s28 = smov 512   ;;  %s803_s29 = smov 32  }
  0x11   :  { %23 = dma.hbm_to_vmem [thread:$0]  %s1107_s0, 2048, %s18_s19, [#allocation3], %s802_s28, %s802_s28, %s803_s29  }
  0x12   :  { %797 = dma.done.wait [#allocation3], 2048  }
  0x13   :  { %798 = vsyncadd [#allocation3], 4294965248  ;;  %v804_v0 = vmov 0.0   ;;  %v805_v1 = vmov 0   ;;  %v854_v2 = vld [vmem:[#allocation2 + $0x8] sm:$0xff]  ;;  %v862_v6 = vld [vmem:[#allocation2 + $0x18] sm:$0xff] }
  0x14   :  { %292 = vmatprep.mubr.f32.mxu0 %v804_v0  ;;  %381 = vmatprep.mubr.f32.mxu1 %v804_v0  ;;  %v856_v3 = vld [vmem:[#allocation2 + $0x28] sm:$0xff]  ;;  %v864_v7 = vld [vmem:[#allocation2 + $0x38] sm:$0xff]  ;;  %v872_v11 = vld [vmem:[#allocation2] sm:$0xff]  ;;  %vm215_vm0 = vcmask 261120  }
  0x15   :  { %743 = vset.pattern.permute.xlu0 %v805_v1  ;;  %744 = vset.pattern.permute.xlu1 %v805_v1  ;;  %v858_v4 = vld [vmem:[#allocation2 + $0x48] sm:$0xff]  ;;  %v60_v5 = vadd.f32 %v856_v3, %v854_v2  ;;  %v868_v9 = vld [vmem:[#allocation2 + $0x58] sm:$0xff]  ;;  %v78_v10 = vadd.f32 %v864_v7, %v862_v6  ;;  %v877_v14 = vld [vmem:[#allocation2 + $0x20] sm:$0xff] }
  0x16   :  { %v866_v8 = vld [vmem:[#allocation2 + $0x68] sm:$0xff]  ;;  %v875_v13 = vld [vmem:[#allocation2 + $0x78] sm:$0xff]  ;;  %v879_v15 = vld [vmem:[#allocation2 + $0x40] sm:$0xff]  ;;  %v51_v17 = vadd.f32 %v877_v14, %v872_v11 }
  0x17   :  { %v61_v12 = vadd.f32 %v60_v5, %v858_v4  ;;  %v79_v16 = vadd.f32 %v78_v10, %v868_v9  ;;  %v884_v18 = vld [vmem:[#allocation2 + $0x10] sm:$0xff]  ;;  %v891_v22 = vld [vmem:[#allocation2 + $0x60] sm:$0xff]  ;;  %v192_v33 = vld [vmem:[%s1109_s2 + $0x8] sm:$0xff] }
  0x18   :  { %v886_v19 = vld [vmem:[#allocation2 + $0x30] sm:$0xff]  ;;  %v52_v25 = vadd.f32 %v51_v17, %v879_v15  ;;  %v191_v27 = vld [vmem:[%s1109_s2] sm:$0xff]  ;;  %v194_v36 = vld [vmem:[%s1109_s2 + $0x18] sm:$0xff] }
  0x19   :  { %v888_v20 = vld [vmem:[#allocation2 + $0x50] sm:$0xff]  ;;  %v62_v21 = vadd.f32 %v61_v12, %v866_v8  ;;  %v69_v23 = vadd.f32 %v886_v19, %v884_v18  ;;  %v80_v24 = vadd.f32 %v79_v16, %v875_v13  ;;  %197 = vperm.xlu0 %743, %v191_v27   ;;  %v426_v43 = vld [vmem:[%s1111_s4] sm:$0xff]  ;;  %v427_v46 = vld [vmem:[%s1111_s4 + $0x8] sm:$0xff] }
  0x1a   :  { %v897_v26 = vld [vmem:[#allocation2 + $0x70] sm:$0xff]  ;;  %v53_v32 = vadd.f32 %v52_v25, %v891_v22  ;;  %v429_v56 = vld [vmem:[%s1111_s4 + $0x18] sm:$0xff] }
  0x1b   :  { %v63_v28 = vrot.slane %v62_v21, 4  ;;  %v70_v29 = vadd.f32 %v69_v23, %v888_v20  ;;  %v193_v30 = vld [vmem:[%s1109_s2 + $0x10] sm:$0xff]  ;;  %v81_v31 = vrot.slane %v80_v24, 4 }
  0x1c   :  { %207 = vperm.xlu1 %744, %v193_v30   ;;  %v54_v38 = vrot.slane %v53_v32, 4  ;;  %v428_v53 = vld [vmem:[%s1111_s4 + $0x10] sm:$0xff] }
  0x1d   :  { %v64_v34 = vadd.f32 %v63_v28, %v62_v21  ;;  %v71_v35 = vadd.f32 %v70_v29, %v897_v26  ;;  %v82_v37 = vadd.f32 %v81_v31, %v80_v24  ;;  %202 = vperm.xlu0 %743, %v192_v33  }
  0x1e   :  { %v55_v42 = vadd.f32 %v54_v38, %v53_v32 }
  0x1f   :  { %v65_v39 = vrot.slane %v64_v34, 2  ;;  %v72_v40 = vrot.slane %v71_v35, 4  ;;  %v83_v41 = vrot.slane %v82_v37, 2 }
  0x20   :  { %212 = vperm.xlu1 %744, %v194_v36   ;;  %v56_v48 = vrot.slane %v55_v42, 2 }
  0x21   :  { %v66_v44 = vadd.f32 %v65_v39, %v64_v34  ;;  %v73_v45 = vadd.f32 %v72_v40, %v71_v35  ;;  %v84_v47 = vadd.f32 %v83_v41, %v82_v37  ;;  %432 = vperm.xlu0 %743, %v426_v43  }
  0x22   :  { %v57_v52 = vadd.f32 %v56_v48, %v55_v42 }
  0x23   :  { %v67_v49 = vrot.slane %v66_v44, 1  ;;  %v74_v50 = vrot.slane %v73_v45, 2  ;;  %v85_v51 = vrot.slane %v84_v47, 1 }
  0x24   :  { %437 = vperm.xlu1 %744, %v427_v46   ;;  %v58_v58 = vrot.slane %v57_v52, 1 }
  0x25   :  { %v68_v54 = vadd.f32 %v67_v49, %v66_v44  ;;  %v75_v55 = vadd.f32 %v74_v50, %v73_v45  ;;  %v86_v57 = vadd.f32 %v85_v51, %v84_v47  ;;  %442 = vperm.xlu0 %743, %v428_v53  }
  0x26   :  { %v59_v61 = vadd.f32 %v58_v58, %v57_v52 }
  0x27   :  { %v88_v59 = vmul.f32 0.03125, %v68_v54  ;;  %v90_v60 = vmul.f32 0.03125, %v86_v57  ;;  %v76_v62 = vrot.slane %v75_v55, 1 }
  0x28   :  { %447 = vperm.xlu1 %744, %v429_v56   ;;  %v87_v32 = vmul.f32 0.03125, %v59_v61 }
  0x29   :  { %v927_v63 = vsub.f32 %v854_v2, %v88_v59  ;;  %v930_v1 = vsub.f32 %v856_v3, %v88_v59  ;;  %v933_v5 = vsub.f32 %v858_v4, %v88_v59  ;;  %v936_v10 = vsub.f32 %v866_v8, %v88_v59 }
  0x2a   :  { %v939_v12 = vsub.f32 %v862_v6, %v90_v60  ;;  %v942_v16 = vsub.f32 %v864_v7, %v90_v60  ;;  %v945_v17 = vsub.f32 %v868_v9, %v90_v60  ;;  %v948_v21 = vsub.f32 %v875_v13, %v90_v60 }
  0x2b   :  { %v108_v23 = vmul.f32 %v927_v63, %v927_v63  ;;  %v112_v24 = vmul.f32 %v930_v1, %v930_v1  ;;  %v116_v25 = vmul.f32 %v933_v5, %v933_v5  ;;  %v120_v30 = vmul.f32 %v936_v10, %v936_v10 }
  0x2c   :  { %v110_v27 = vmul.f32 %v939_v12, %v939_v12  ;;  %v114_v28 = vmul.f32 %v942_v16, %v942_v16  ;;  %v118_v29 = vmul.f32 %v945_v17, %v945_v17  ;;  %v77_v33 = vadd.f32 %v76_v62, %v75_v55 }
  0x2d   :  { %v132_v31 = vadd.f32 %v112_v24, %v108_v23  ;;  %v122_v34 = vmul.f32 %v948_v21, %v948_v21  ;;  %v967_v37 = vsub.f32 %v872_v11, %v87_v32  ;;  %v970_v38 = vsub.f32 %v877_v14, %v87_v32 }
  0x2e   :  { %v150_v35 = vadd.f32 %v114_v28, %v110_v27  ;;  %v973_v39 = vsub.f32 %v879_v15, %v87_v32  ;;  %v976_v41 = vsub.f32 %v891_v22, %v87_v32  ;;  %v89_v42 = vmul.f32 0.03125, %v77_v33 }
  0x2f   :  { %v133_v36 = vadd.f32 %v132_v31, %v116_v25  ;;  %v107_v44 = vmul.f32 %v967_v37, %v967_v37  ;;  %v111_v45 = vmul.f32 %v970_v38, %v970_v38 }
  0x30   :  { %v151_v40 = vadd.f32 %v150_v35, %v118_v29  ;;  %v115_v46 = vmul.f32 %v973_v39, %v973_v39  ;;  %v119_v48 = vmul.f32 %v976_v41, %v976_v41  ;;  %v987_v49 = vsub.f32 %v884_v18, %v89_v42 }
  0x31   :  { %v134_v43 = vadd.f32 %v133_v36, %v120_v30  ;;  %v990_v50 = vsub.f32 %v886_v19, %v89_v42  ;;  %v123_v52 = vadd.f32 %v111_v45, %v107_v44  ;;  %v993_v53 = vsub.f32 %v888_v20, %v89_v42 }
  0x32   :  { %v152_v47 = vadd.f32 %v151_v40, %v122_v34  ;;  %v996_v54 = vsub.f32 %v897_v26, %v89_v42  ;;  %v109_v56 = vmul.f32 %v987_v49, %v987_v49 }
  0x33   :  { %v135_v51 = vrot.slane %v134_v43, 4  ;;  %v113_v57 = vmul.f32 %v990_v50, %v990_v50  ;;  %v124_v59 = vadd.f32 %v123_v52, %v115_v46  ;;  %v117_v60 = vmul.f32 %v993_v53, %v993_v53 }
  0x34   :  { %v153_v55 = vrot.slane %v152_v47, 4  ;;  %v121_v62 = vmul.f32 %v996_v54, %v996_v54 }
  0x35   :  { %v136_v58 = vadd.f32 %v135_v51, %v134_v43  ;;  %v141_v23 = vadd.f32 %v113_v57, %v109_v56  ;;  %v125_v25 = vadd.f32 %v124_v59, %v119_v48 }
  0x36   :  { %v154_v61 = vadd.f32 %v153_v55, %v152_v47 }
  0x37   :  { %v137_v24 = vrot.slane %v136_v58, 2  ;;  %v142_v28 = vadd.f32 %v141_v23, %v117_v60  ;;  %v126_v30 = vrot.slane %v125_v25, 4 }
  0x38   :  { %v155_v27 = vrot.slane %v154_v61, 2 }
  0x39   :  { %v138_v29 = vadd.f32 %v137_v24, %v136_v58  ;;  %v143_v32 = vadd.f32 %v142_v28, %v121_v62  ;;  %v127_v34 = vadd.f32 %v126_v30, %v125_v25 }
  0x3a   :  { %v156_v31 = vadd.f32 %v155_v27, %v154_v61 }
  0x3b   :  { %v139_v33 = vrot.slane %v138_v29, 1  ;;  %v144_v36 = vrot.slane %v143_v32, 4  ;;  %v128_v42 = vrot.slane %v127_v34, 2 }
  0x3c   :  { %v157_v35 = vrot.slane %v156_v31, 1 }
  0x3d   :  { %v140_v40 = vadd.f32 %v139_v33, %v138_v29  ;;  %v145_v44 = vadd.f32 %v144_v36, %v143_v32  ;;  %v129_v46 = vadd.f32 %v128_v42, %v127_v34 }
  0x3e   :  { %v158_v43 = vadd.f32 %v157_v35, %v156_v31 }
  0x3f   :  { %v160_v45 = vmul.f32 0.03125, %v140_v40  ;;  %v146_v51 = vrot.slane %v145_v44, 2  ;;  %v130_v48 = vrot.slane %v129_v46, 1 }
  0x40   :  { %v162_v47 = vmul.f32 0.03125, %v158_v43 }
  0x41   :  { %v164_v52 = vadd.f32 1e-05, %v160_v45  ;;  %v147_v56 = vadd.f32 %v146_v51, %v145_v44  ;;  %v131_v57 = vadd.f32 %v130_v48, %v129_v46 }
  0x42   :  { %v166_v55 = vadd.f32 1e-05, %v162_v47 }
  0x43   :  { %745 = vrsqrt.f32 %v164_v52  ;;  %v148_v58 = vrot.slane %v147_v56, 1  ;;  %v159_v59 = vmul.f32 0.03125, %v131_v57 }
  0x44   :  { %747 = vrsqrt.f32 %v166_v55 }
  0x45   :  { %v149_v60 = vadd.f32 %v148_v58, %v147_v56  ;;  %v163_v61 = vadd.f32 1e-05, %v159_v59 }
  0x47   :  { %v161_v62 = vmul.f32 0.03125, %v149_v60  ;;  %749 = vrsqrt.f32 %v163_v61 }
  0x49   :  { %v165_v23 = vadd.f32 1e-05, %v161_v62 }
  0x4b   :  { %751 = vrsqrt.f32 %v165_v23 }
  0x4d   :  { %v746_v24 = vpop.eup %745 }
  0x4e   :  { %v748_v25 = vpop.eup %747  ;;  %v172_v27 = vmul.f32 %v746_v24, %v927_v63  ;;  %v176_v28 = vmul.f32 %v746_v24, %v930_v1  ;;  %v180_v33 = vmul.f32 %v746_v24, %v933_v5  ;;  %v184_v34 = vmul.f32 %v746_v24, %v936_v10 }
  0x4f   :  { %v174_v29 = vmul.f32 %v748_v25, %v939_v12  ;;  %v178_v30 = vmul.f32 %v748_v25, %v942_v16  ;;  %v182_v36 = vmul.f32 %v748_v25, %v945_v17  ;;  %v186_v40 = vmul.f32 %v748_v25, %v948_v21 }
  0x50   :  { %v705_v31 = vpack.c.bf16 %v176_v28, %v172_v27  ;;  %v709_v42 = vpack.c.bf16 %v184_v34, %v180_v33 }
  0x51   :  { %v713_v32 = vpack.c.bf16 %v178_v30, %v174_v29  ;;  %v750_v35 = vpop.eup %749  ;;  %v717_v21 = vpack.c.bf16 %v186_v40, %v182_v36 }
  0x52   :  { %706 = vmatprep.subr.bf16.mxu0 %v705_v31  ;;  %v171_v63 = vmul.f32 %v750_v35, %v967_v37  ;;  %v175_v1 = vmul.f32 %v750_v35, %v970_v38  ;;  %v179_v12 = vmul.f32 %v750_v35, %v973_v39  ;;  %v183_v16 = vmul.f32 %v750_v35, %v976_v41  ;;  %v187_v39 = vld [vmem:[%s1108_s1] sm:$0xff]  ;;  %v188_v41 = vld [vmem:[%s1108_s1 + $0x8] sm:$0xff] }
  0x53   :  { %714 = vmatprep.subr.bf16.mxu1 %v713_v32 }
  0x54   :  { %v707_v5 = vpack.c.bf16 %v175_v1, %v171_v63  ;;  %v711_v37 = vpack.c.bf16 %v183_v16, %v179_v12 }
  0x55   :  { %v752_v43 = vpop.eup %751 }
  0x56   :  { %v173_v10 = vmul.f32 %v752_v43, %v987_v49  ;;  %v177_v44 = vmul.f32 %v752_v43, %v990_v50  ;;  %v181_v45 = vmul.f32 %v752_v43, %v993_v53  ;;  %v185_v17 = vmul.f32 %v752_v43, %v996_v54  ;;  %708 = vmatpush1.bf16.msra.mxu0 %v707_v5  ;;  %v189_v49 = vld [vmem:[%s1108_s1 + $0x10] sm:$0xff]  ;;  %v190_v50 = vld [vmem:[%s1108_s1 + $0x18] sm:$0xff] }
  0x57   :  { %710 = vmatprep.subr.bf16.mxu0 %v709_v42 }
  0x58   :  { %v715_v46 = vpack.c.bf16 %v177_v44, %v173_v10  ;;  %v719_v38 = vpack.c.bf16 %v185_v17, %v181_v45 }
  0x5a   :  { %716 = vmatpush1.bf16.msra.mxu1 %v715_v46  ;;  %712 = vmatpush1.bf16.msra.mxu0 %v711_v37 }
  0x5b   :  { %718 = vmatprep.subr.bf16.mxu1 %v717_v21 }
  0x5d   :  { %689 = vmatmul.mubr.msk.f32.vlgmr.msra.gmra.mrb[0].mxu0 %vm215_vm0, %v187_v39 }
  0x5e   :  { %720 = vmatpush1.bf16.msra.mxu1 %v719_v38  ;;  %298 = vmatprep.mubr.f32.mxu0 %v804_v0 }
  0x61   :  { %693 = vmatmul.mubr.msk.f32.vlgmr.msra.gmra.mrb[0].mxu1 %vm215_vm0, %v187_v39  ;;  %690 = vmatmul.mubr.msk.f32.gmra.mrb[2].mxu0 %vm215_vm0, %v188_v41 }
  0x62   :  { %387 = vmatprep.mubr.f32.mxu1 %v804_v0  ;;  %304 = vmatprep.mubr.f32.mxu0 %v804_v0 }
  0x65   :  { %694 = vmatmul.mubr.msk.f32.gmra.mrb[2].mxu1 %vm215_vm0, %v188_v41  ;;  %691 = vmatmul.mubr.msk.f32.gmra.mrb[4].mxu0 %vm215_vm0, %v189_v49 }
  0x66   :  { %393 = vmatprep.mubr.f32.mxu1 %v804_v0  ;;  %310 = vmatprep.mubr.f32.mxu0 %v804_v0 }
  0x69   :  { %695 = vmatmul.mubr.msk.f32.gmra.mrb[4].mxu1 %vm215_vm0, %v189_v49  ;;  %692 = vmatmul.mubr.msk.f32.gmra.mrb[6].mxu0 %vm215_vm0, %v190_v50 }
  0x6a   :  { %399 = vmatprep.mubr.f32.mxu1 %v804_v0  ;;  %526 = vmatprep.mubr.f32.mxu0 %v804_v0 }
  0x6d   :  { %696 = vmatmul.mubr.msk.f32.gmra.mrb[6].mxu1 %vm215_vm0, %v190_v50 }
  0x6e   :  { %615 = vmatprep.mubr.f32.mxu1 %v804_v0 }
  0x98   :  { %v198_v53 = vpop.permute.xlu0 %197 }
  0x9b   :  { %v208_v58 = vpop.permute.xlu1 %207 }
  0x9c   :  { %v203_v51 = vpop.permute.xlu0 %202 }
  0x9f   :  { %v213_v1 = vpop.permute.xlu1 %212 }
 0x130   :  { %v294_v54 = vpop.f32.mrb[0].mxu0 }
 0x131   :  { %v296_v47 = vpop.f32.mrb[1].mxu0  ;;  %v295_v52 = vadd.f32 %v294_v54, %v198_v53 }
 0x132   :  { %v297_v55 = vadd.f32 %v296_v47, %v198_v53 }
 0x133   :  { %v406_v23 = vmax.f32 %v295_v52, 0.0 }
 0x134   :  { %v383_v48 = vpop.f32.mrb[0].mxu1  ;;  %v300_v57 = vpop.f32.mrb[2].mxu0  ;;  %v407_v28 = vmax.f32 %v297_v55, 0.0 }
 0x135   :  { %v385_v56 = vpop.f32.mrb[1].mxu1  ;;  %v301_v59 = vadd.f32 %v300_v57, %v203_v51  ;;  %v302_v60 = vpop.f32.mrb[3].mxu0  ;;  %v384_v61 = vadd.f32 %v383_v48, %v198_v53 }
 0x136   :  { %v303_v62 = vadd.f32 %v302_v60, %v203_v51  ;;  %v386_v24 = vadd.f32 %v385_v56, %v198_v53 }
 0x137   :  { %v410_v25 = vmax.f32 %v301_v59, 0.0  ;;  %v408_v36 = vmax.f32 %v384_v61, 0.0 }
 0x138   :  { %v389_v27 = vpop.f32.mrb[2].mxu1  ;;  %v411_v30 = vmax.f32 %v303_v62, 0.0  ;;  %v306_v32 = vpop.f32.mrb[4].mxu0  ;;  %v409_v12 = vmax.f32 %v386_v24, 0.0  ;;  %v424_v24 = vld [vmem:[%s1110_s3 + $0x10] sm:$0xff] }
 0x139   :  { %v390_v29 = vadd.f32 %v389_v27, %v203_v51  ;;  %v391_v31 = vpop.f32.mrb[3].mxu1  ;;  %v723_v33 = vpack.c.bf16 %v410_v25, %v406_v23  ;;  %v308_v35 = vpop.f32.mrb[5].mxu0  ;;  %v307_v42 = vadd.f32 %v306_v32, %v208_v58  ;;  %v423_v23 = vld [vmem:[%s1110_s3 + $0x8] sm:$0xff]  ;;  %v425_v25 = vld [vmem:[%s1110_s3 + $0x18] sm:$0xff] }
 0x13a   :  { %v392_v34 = vadd.f32 %v391_v31, %v203_v51  ;;  %v721_v63 = vpack.c.bf16 %v411_v30, %v407_v28  ;;  %v309_v10 = vadd.f32 %v308_v35, %v208_v58  ;;  %v433_v27 = vpop.permute.xlu0 %432  ;;  %v438_v32 = vpop.permute.xlu1 %437 }
 0x13b   :  { %v412_v40 = vmax.f32 %v390_v29, 0.0  ;;  %v414_v39 = vmax.f32 %v307_v42, 0.0 }
 0x13c   :  { %v413_v16 = vmax.f32 %v392_v34, 0.0  ;;  %v395_v43 = vpop.f32.mrb[4].mxu1  ;;  %v312_v45 = vpop.f32.mrb[6].mxu0  ;;  %722 = vmatprep.subr.bf16.mxu0 %v721_v63  ;;  %v415_v53 = vmax.f32 %v309_v10, 0.0 }
 0x13d   :  { %v731_v5 = vpack.c.bf16 %v412_v40, %v408_v36  ;;  %v397_v44 = vpop.f32.mrb[5].mxu1  ;;  %v313_v21 = vadd.f32 %v312_v45, %v213_v1  ;;  %v314_v37 = vpop.f32.mrb[7].mxu0  ;;  %724 = vmatpush1.bf16.msra.mxu0 %v723_v33  ;;  %v396_v46 = vadd.f32 %v395_v43, %v208_v58 }
 0x13e   :  { %v729_v17 = vpack.c.bf16 %v413_v16, %v409_v12  ;;  %v315_v38 = vadd.f32 %v314_v37, %v213_v1  ;;  %v398_v41 = vadd.f32 %v397_v44, %v208_v58  ;;  %v422_v58 = vld [vmem:[%s1110_s3] sm:$0xff]  ;;  %v443_v43 = vpop.permute.xlu0 %442  ;;  %s806_s3 = smov [#allocation5]  }
 0x13f   :  { %v418_v49 = vmax.f32 %v313_v21, 0.0  ;;  %v416_v55 = vmax.f32 %v396_v46, 0.0  ;;  %s677_s11 = sshll.u32 %s806_s3, 4  ;;  %s678_s11 = int_to_ptr.vmem [resolvable:$true] %s677_s11 }
 0x140   :  { %v401_v50 = vpop.f32.mrb[6].mxu1  ;;  %730 = vmatprep.subr.bf16.mxu1 %v729_v17  ;;  %v419_v47 = vmax.f32 %v315_v38, 0.0  ;;  %v417_v59 = vmax.f32 %v398_v41, 0.0  ;;  %s775_s12 = scalar_lea.vmem %s678_s11, 2048  ;;  %p780_p9 = scmp.lt.s32.totalorder %s678_s11, %s678_s11 }
 0x141   :  { %v402_v54 = vadd.f32 %v401_v50, %v213_v1  ;;  %v403_v51 = vpop.f32.mrb[7].mxu1  ;;  %732 = vmatpush1.bf16.msra.mxu1 %v731_v5  ;;  %v727_v52 = vpack.c.bf16 %v418_v49, %v414_v39  ;;  %v448_v39 = vpop.permute.xlu1 %447  ;;  %p776_p8 = scmp.ne.s32.totalorder %s678_s11, %s775_s12  ;;  %p781_p10 = scmp.lt.s32.totalorder %s775_s12, %s775_s12 }
 0x142   :  { %v404_v48 = vadd.f32 %v403_v51, %v213_v1  ;;  %v725_v57 = vpack.c.bf16 %v419_v47, %v415_v53 }
 0x143   :  { %v420_v56 = vmax.f32 %v402_v54, 0.0  ;;  %p782_p11 = por %p781_p10, %p780_p9 }
 0x144   :  { %v421_v60 = vmax.f32 %v404_v48, 0.0  ;;  %726 = vmatprep.subr.bf16.mxu0 %v725_v57 }
 0x145   :  { %v735_v61 = vpack.c.bf16 %v420_v56, %v416_v55  ;;  %728 = vmatpush1.bf16.msra.mxu0 %v727_v52  ;;  %p783_p12 = pnand %p782_p11, %p776_p8 }
 0x146   :  { %v733_v62 = vpack.c.bf16 %v421_v60, %v417_v59 }
 0x148   :  { %734 = vmatprep.subr.bf16.mxu1 %v733_v62  ;;  %697 = vmatmul.mubr.msk.f32.vlgmr.msra.gmra.mrb[8].mxu0 %vm215_vm0, %v422_v58 }
 0x149   :  { %736 = vmatpush1.bf16.msra.mxu1 %v735_v61  ;;  %532 = vmatprep.mubr.f32.mxu0 %v804_v0 }
 0x14c   :  { %701 = vmatmul.mubr.msk.f32.vlgmr.msra.gmra.mrb[8].mxu1 %vm215_vm0, %v422_v58  ;;  %698 = vmatmul.mubr.msk.f32.gmra.mrb[10].mxu0 %vm215_vm0, %v423_v23 }
 0x14d   :  { %621 = vmatprep.mubr.f32.mxu1 %v804_v0  ;;  %538 = vmatprep.mubr.f32.mxu0 %v804_v0 }
 0x150   :  { %702 = vmatmul.mubr.msk.f32.gmra.mrb[10].mxu1 %vm215_vm0, %v423_v23  ;;  %699 = vmatmul.mubr.msk.f32.gmra.mrb[12].mxu0 %vm215_vm0, %v424_v24 }
 0x151   :  { %627 = vmatprep.mubr.f32.mxu1 %v804_v0  ;;  %544 = vmatprep.mubr.f32.mxu0 %v804_v0 }
 0x154   :  { %703 = vmatmul.mubr.msk.f32.gmra.mrb[12].mxu1 %vm215_vm0, %v424_v24  ;;  %700 = vmatmul.mubr.msk.f32.gmra.mrb[14].mxu0 %vm215_vm0, %v425_v25 }
 0x155   :  { %633 = vmatprep.mubr.f32.mxu1 %v804_v0 }
 0x158   :  { %704 = vmatmul.mubr.msk.f32.gmra.mrb[14].mxu1 %vm215_vm0, %v425_v25 }
 0x21b   :  { %v528_v28 = vpop.f32.mrb[8].mxu0 }
 0x21c   :  { %v529_v29 = vadd.f32 %v528_v28, %v433_v27  ;;  %v530_v30 = vpop.f32.mrb[9].mxu0 }
 0x21d   :  { %v531_v31 = vadd.f32 %v530_v30, %v433_v27 }
 0x21e   :  { %v640_v33 = vadd.f32 %v529_v29, %v872_v11 }
 0x21f   :  { %v617_v34 = vpop.f32.mrb[8].mxu1  ;;  %v641_v36 = vadd.f32 %v531_v31, %v854_v2  ;;  %v534_v63 = vpop.f32.mrb[10].mxu0 }
 0x220   :  { %v618_v35 = vadd.f32 %v617_v34, %v433_v27  ;;  %v619_v40 = vpop.f32.mrb[9].mxu1  ;;  %656 = vst [vmem:[#allocation5] sm:$0xff] %v640_v33  ;;  %v535_v1 = vadd.f32 %v534_v63, %v438_v32  ;;  %v536_v12 = vpop.f32.mrb[11].mxu0 }
 0x221   :  { %v620_v0 = vadd.f32 %v619_v40, %v433_v27  ;;  %657 = vst [vmem:[#allocation5 + $0x8] sm:$0xff] %v641_v36  ;;  %v537_v42 = vadd.f32 %v536_v12, %v438_v32 }
 0x222   :  { %v642_v16 = vadd.f32 %v618_v35, %v884_v18  ;;  %v644_v10 = vadd.f32 %v535_v1, %v877_v14 }
 0x223   :  { %v643_v5 = vadd.f32 %v620_v0, %v862_v6  ;;  %v623_v11 = vpop.f32.mrb[10].mxu1  ;;  %v645_v2 = vadd.f32 %v537_v42, %v856_v3  ;;  %v540_v17 = vpop.f32.mrb[12].mxu0 }
 0x224   :  { %658 = vst [vmem:[#allocation5 + $0x10] sm:$0xff] %v642_v16  ;;  %v624_v44 = vadd.f32 %v623_v11, %v438_v32  ;;  %v625_v45 = vpop.f32.mrb[11].mxu1  ;;  %660 = vst [vmem:[#allocation5 + $0x20] sm:$0xff] %v644_v10  ;;  %v541_v37 = vadd.f32 %v540_v17, %v443_v43  ;;  %v542_v46 = vpop.f32.mrb[13].mxu0 }
 0x225   :  { %659 = vst [vmem:[#allocation5 + $0x18] sm:$0xff] %v643_v5  ;;  %v626_v21 = vadd.f32 %v625_v45, %v438_v32  ;;  %661 = vst [vmem:[#allocation5 + $0x28] sm:$0xff] %v645_v2  ;;  %v543_v38 = vadd.f32 %v542_v46, %v443_v43 }
 0x226   :  { %v646_v18 = vadd.f32 %v624_v44, %v886_v19  ;;  %v648_v14 = vadd.f32 %v541_v37, %v879_v15 }
 0x227   :  { %v647_v6 = vadd.f32 %v626_v21, %v864_v7  ;;  %v629_v41 = vpop.f32.mrb[12].mxu1  ;;  %v649_v3 = vadd.f32 %v543_v38, %v858_v4  ;;  %v546_v53 = vpop.f32.mrb[14].mxu0 }
 0x228   :  { %662 = vst [vmem:[#allocation5 + $0x30] sm:$0xff] %v646_v18  ;;  %v630_v49 = vadd.f32 %v629_v41, %v443_v43  ;;  %v631_v50 = vpop.f32.mrb[13].mxu1  ;;  %664 = vst [vmem:[#allocation5 + $0x40] sm:$0xff] %v648_v14  ;;  %v547_v47 = vadd.f32 %v546_v53, %v448_v39  ;;  %v548_v51 = vpop.f32.mrb[15].mxu0 }
 0x229   :  { %663 = vst [vmem:[#allocation5 + $0x38] sm:$0xff] %v647_v6  ;;  %v632_v54 = vadd.f32 %v631_v50, %v443_v43  ;;  %665 = vst [vmem:[#allocation5 + $0x48] sm:$0xff] %v649_v3  ;;  %v549_v52 = vadd.f32 %v548_v51, %v448_v39 }
 0x22a   :  { %v650_v19 = vadd.f32 %v630_v49, %v888_v20  ;;  %v652_v15 = vadd.f32 %v547_v47, %v891_v22 }
 0x22b   :  { %v651_v7 = vadd.f32 %v632_v54, %v868_v9  ;;  %v635_v48 = vpop.f32.mrb[14].mxu1  ;;  %v653_v4 = vadd.f32 %v549_v52, %v866_v8 }
 0x22c   :  { %666 = vst [vmem:[#allocation5 + $0x50] sm:$0xff] %v650_v19  ;;  %v636_v55 = vadd.f32 %v635_v48, %v448_v39  ;;  %v637_v56 = vpop.f32.mrb[15].mxu1  ;;  %668 = vst [vmem:[#allocation5 + $0x60] sm:$0xff] %v652_v15 }
 0x22d   :  { %667 = vst [vmem:[#allocation5 + $0x58] sm:$0xff] %v651_v7  ;;  %v638_v57 = vadd.f32 %v637_v56, %v448_v39  ;;  %669 = vst [vmem:[#allocation5 + $0x68] sm:$0xff] %v653_v4 }
 0x22e   :  { %v654_v59 = vadd.f32 %v636_v55, %v897_v26 }
 0x22f   :  { %v655_v20 = vadd.f32 %v638_v57, %v875_v13 }
 0x230   :  { %670 = vst [vmem:[#allocation5 + $0x70] sm:$0xff] %v654_v59 }
 0x231   :  { %671 = vst [vmem:[#allocation5 + $0x78] sm:$0xff] %v655_v20 }
 0x232   :  { %786 = shalt.err (!%p783_p12)
}
 0x233   :  { %s787_s15 = scalar_lea.hbm %s1112_s5, 2048 }
 0x234   :  { %p788_p13 = scmp.ne.s32.totalorder %s1112_s5, %s787_s15  ;;  %p791_p0 = scmp.lt.u32.totalorder %s787_s15, %s1112_s5 }
 0x236   :  { %p793_p1 = pnand %p791_p0, %p788_p13 }
 0x238   :  { %796 = shalt.err (!%p793_p1)
}
 0x239   :  { %683 = dma.vmem_to_hbm [thread:$0]  %s678_s11, 2048, %s1112_s5, [#allocation4], %s802_s28, %s802_s28, %s803_s29  }
 0x23a   :  { %799 = dma.done.wait [#allocation4], 2048  }
 0x23b   :  { %800 = vsyncadd [#allocation4], 4294965248 }
 0x23c   :  { %687 = vsyncpa [#allocation3], 1 }
 0x23d   :  { %688 = vsyncpa [#allocation4], 1 }

</bundles_post_ra>
